<compile_context>
chip_gen: v6e
topology: v6e:2x2x1
jax: 0.10.0
libtpu: 0.0.40
codegen_flags: <defaults>
</compile_context>

<pallas_src>
import functools

import jax
import jax.numpy as jnp
from jax.experimental import pallas as pl
from jax.experimental.pallas import tpu as pltpu


def _outconv_kernel(x_ref, w_ref, b_ref, o_ref):
    # x_ref: (C_in, t_hw), w_ref: (C_out, C_in), b_ref: (C_out, 1),
    # o_ref: (C_out, t_hw)
    acc = jnp.dot(w_ref[...], x_ref[...], preferred_element_type=jnp.float32)
    o_ref[...] = (acc + b_ref[...]).astype(o_ref.dtype)


def _pick_spatial_tile(hw, c_in, c_out, itemsize,
                       target=2048, vmem_budget=8 * 1024 * 1024):
    """Pick the spatial tile (lane axis) size.

    - If the whole spatial extent fits the budget, use it (one block / image).
    - Otherwise use the largest multiple of 128 <= target that keeps the
      double-buffered input + output blocks under `vmem_budget` (conservative
      enough for v5e's 16 MiB / v7x's 32 MiB scoped VMEM defaults).
    """
    per_col = 2 * (c_in + c_out) * itemsize          # double-buffered in + out
    vmem_cap = max(128, (vmem_budget // per_col) // 128 * 128)
    t = min(target, vmem_cap)
    if hw <= t:
        return hw                                    # full spatial dim per block
    return max(128, (t // 128) * 128)


@functools.partial(jax.jit, static_argnames=("target_tile",))
def outconv_forward(x_nchw, weight, bias, *, target_tile=2048):
    """1x1 conv forward (matches nn.Conv2d(in_ch, out_ch, 1)).

    x_nchw: (N, C_in, H, W) float32
    weight: (C_out, C_in)   float32   (the (C_out, C_in, 1, 1) weight squeezed)
    bias:   (C_out,)        float32
    returns (N, C_out, H, W) float32
    """
    N, C_in, H, W = x_nchw.shape
    C_out = weight.shape[0]
    HW = H * W

    # Free contiguous reshape: NCHW -> (N, C_in, H*W). No transpose, no pad.
    x_flat = x_nchw.reshape(N, C_in, HW)
    b2d = bias.reshape(C_out, 1)

    t_hw = _pick_spatial_tile(HW, C_in, C_out, x_nchw.dtype.itemsize,
                              target=target_tile)
    grid = (N, pl.cdiv(HW, t_hw))  # partial tail block (if any) is masked by Pallas

    out_flat = pl.pallas_call(
        _outconv_kernel,
        out_shape=jax.ShapeDtypeStruct((N, C_out, HW), x_nchw.dtype),
        grid_spec=pltpu.PrefetchScalarGridSpec(
            num_scalar_prefetch=0,
            grid=grid,
            in_specs=[
                # x: squeeze the batch dim, tile the spatial axis.
                pl.BlockSpec((None, C_in, t_hw), lambda n, j: (n, 0, j)),
                # full weight, resident across the grid
                pl.BlockSpec((C_out, C_in), lambda n, j: (0, 0)),
                # full bias, resident across the grid
                pl.BlockSpec((C_out, 1), lambda n, j: (0, 0)),
            ],
            # lane-dense output: last dim is the spatial tile (multiple of 128
            # whenever HW >= 128), so stores are full-width vst, not vst.msk.
            out_specs=pl.BlockSpec((None, C_out, t_hw), lambda n, j: (n, 0, j)),
        ),
        compiler_params=pltpu.CompilerParams(
            dimension_semantics=("parallel", "parallel"),
        ),
    )(x_flat, weight, b2d)

    # Free contiguous reshape back to NCHW.
    return out_flat.reshape(N, C_out, H, W)


def reference_outconv(x_nchw, weight, bias):
    # Pure-JAX reference of the 1x1 conv (NCHW).
    return jnp.einsum("nchw,oc->nohw", x_nchw, weight) + bias[None, :, None, None]


if __name__ == "__main__":
    key = jax.random.PRNGKey(0)
    kx, kw, kb = jax.random.split(key, 3)

    # Small shapes consistent with the module's forward: NCHW input.
    N, C_in, H, W = 2, 4, 16, 16
    C_out = 3

    x = jax.random.normal(kx, (N, C_in, H, W), dtype=jnp.float32)

    # Deterministic parameter init (mimics PyTorch's uniform fan-in init bounds).
    bound = 1.0 / (C_in ** 0.5)
    weight = jax.random.uniform(kw, (C_out, C_in), minval=-bound, maxval=bound,
                                dtype=jnp.float32)
    bias = jax.random.uniform(kb, (C_out,), minval=-bound, maxval=bound,
                              dtype=jnp.float32)

    out = outconv_forward(x, weight, bias)
    out = jax.block_until_ready(out)

    ref = reference_outconv(x, weight, bias)
    assert out.shape == (N, C_out, H, W), out.shape
    assert jnp.allclose(out, ref, atol=1e-5, rtol=1e-5), "mismatch vs reference"

    print("KERNEL_OK")
</pallas_src>

<mosaic_0001>
module attributes {stable_mosaic.version = 11 : i64} {
  func.func @_outconv_kernel(%arg0: i32, %arg1: i32, %arg2: memref<1x4x256xf32, #tpu.memory_space<vmem>>, %arg3: memref<3x4xf32, #tpu.memory_space<vmem>>, %arg4: memref<3x1xf32, #tpu.memory_space<vmem>>, %arg5: memref<1x3x256xf32, #tpu.memory_space<vmem>>) attributes {dimension_semantics = [#tpu.dimension_semantics<parallel>, #tpu.dimension_semantics<parallel>], iteration_bounds = array<i64: 2, 1>, scalar_prefetch = 0 : i64, scratch_operands = 0 : i64, tpu.core_type = #tpu.core_type<tc>, window_params = [{transform_indices = @transform_0, window_bounds = array<i64: 1, 4, 256>}, {pipeline_mode = #tpu.pipeline_mode<synchronous>, transform_indices = @transform_1, window_bounds = array<i64: 3, 4>}, {pipeline_mode = #tpu.pipeline_mode<synchronous>, transform_indices = @transform_2, window_bounds = array<i64: 3, 1>}, {transform_indices = @transform_3, window_bounds = array<i64: 1, 3, 256>}]} {
    %c0 = arith.constant 0 : index
    %c0_0 = arith.constant 0 : index
    %0 = vector.load %arg3[%c0, %c0_0] : memref<3x4xf32, #tpu.memory_space<vmem>>, vector<3x4xf32>
    %c0_1 = arith.constant 0 : index
    %c0_2 = arith.constant 0 : index
    %c0_3 = arith.constant 0 : index
    %1 = vector.load %arg2[%c0_1, %c0_2, %c0_3] : memref<1x4x256xf32, #tpu.memory_space<vmem>>, vector<1x4x256xf32>
    %2 = vector.shape_cast %1 : vector<1x4x256xf32> to vector<4x256xf32>
    %cst = arith.constant dense<0.000000e+00> : vector<3x256xf32>
    %3 = tpu.matmul %0, %2, %cst {dimension_numbers = #tpu.dot_dimension_numbers<[1], [0], [0], [1], [0, 0, 1, 1], [], []>} : vector<3x4xf32>, vector<4x256xf32>, vector<3x256xf32> -> vector<3x256xf32>
    %c0_4 = arith.constant 0 : index
    %c0_5 = arith.constant 0 : index
    %4 = vector.load %arg4[%c0_4, %c0_5] : memref<3x1xf32, #tpu.memory_space<vmem>>, vector<3x1xf32>
    %5 = vector.broadcast %4 : vector<3x1xf32> to vector<3x256xf32>
    %6 = arith.addf %3, %5 : vector<3x256xf32>
    %c0_6 = arith.constant 0 : index
    %c0_7 = arith.constant 0 : index
    %c0_8 = arith.constant 0 : index
    %7 = vector.load %arg5[%c0_6, %c0_7, %c0_8] : memref<1x3x256xf32, #tpu.memory_space<vmem>>, vector<1x3x256xf32>
    %8 = vector.shape_cast %7 : vector<1x3x256xf32> to vector<3x256xf32>
    %9 = vector.shape_cast %6 : vector<3x256xf32> to vector<1x3x256xf32>
    tpu.vector_store %arg5[%c0_6, %c0_7, %c0_8], %9 {strides = array<i32>} : memref<1x3x256xf32, #tpu.memory_space<vmem>>, vector<1x3x256xf32>,
    return
  }
  func.func @transform_0(%arg0: i32, %arg1: i32) -> (i32, i32, i32) {
    %c0_i32 = arith.constant 0 : i32
    %c0_i32_0 = arith.constant 0 : i32
    return %arg0, %c0_i32, %arg1 : i32, i32, i32
  }
  func.func @transform_1(%arg0: i32, %arg1: i32) -> (i32, i32) {
    %c0_i32 = arith.constant 0 : i32
    %c0_i32_0 = arith.constant 0 : i32
    %c0_i32_1 = arith.constant 0 : i32
    return %c0_i32, %c0_i32_0 : i32, i32
  }
  func.func @transform_2(%arg0: i32, %arg1: i32) -> (i32, i32) {
    %c0_i32 = arith.constant 0 : i32
    %c0_i32_0 = arith.constant 0 : i32
    %c0_i32_1 = arith.constant 0 : i32
    return %c0_i32, %c0_i32_0 : i32, i32
  }
  func.func @transform_3(%arg0: i32, %arg1: i32) -> (i32, i32, i32) {
    %c0_i32 = arith.constant 0 : i32
    %c0_i32_0 = arith.constant 0 : i32
    return %arg0, %c0_i32, %arg1 : i32, i32, i32
  }
}

</mosaic_0001>

<bundles_post_ra>
// kernel: outconv_forward.1
= control target key start
LH: loop header
LB: loop body
LE: loop exit
PB: predicated region body
PF: predicated region fallthrough
CT: control target
= control target key end

     0   :  { %s482_s12 = smov 0   ;;  %s484_s13 = smov 0   ;;  %s521_s0 = inlined_call_operand.vmem [shape: f32[2,4,256], index: 0, kind: input, shape index: {}]   ;;  %s522_s1 = inlined_call_operand.vmem [shape: f32[3,4], index: 1, kind: input, shape index: {}]   ;;  %s523_s2 = inlined_call_operand.vmem [shape: f32[3,1], index: 2, kind: input, shape index: {}]   ;;  %s524_s3 = inlined_call_operand.vmem [shape: f32[2,3,256], index: 3, kind: output, shape index: {}]  }
   0x1   :  { %s486_s14 = smov 0  }
   0x2 LB: > { %s25_s15 = sadd.s32 1, %s454_s13  ;;  %p396_p0 = scmp.ge.s32.totalorder %s458_s14, 1  ;;  %s458_s14 = sphi %s486_s14, %s13_s14   ;;  %s454_s13 = sphi %s484_s13, %s526_s13   ;;  %s450_s12 = sphi %s482_s12, %s525_s12  }
   0x3   : > { %p27_p1 = scmp.ge.s32.totalorder %s25_s15, 2  ;;  %p158_p2 = scmp.lt.s32.totalorder %s458_s14, 3 }
   0x5   : > { %s528_s15 = smov (%p27_p1, %s25_s15), 0  ;;  %p159_p3 = pnand %p396_p0, %p158_p2 }
   0x6   : > { %p191_p4 = scmp.lt.s32.totalorder (!%p159_p3), %s450_s12, 1 }
   0x7   : > { %162 = sbr.rel (%p159_p3) target bundleno = 220 (0xdc), region = 32 }
   0xc   : > { %v460_v0 = vmov 0.0   ;;  %v212_v1 = vld [vmem:[%s523_s2] sm:$0x7]  ;;  %s530_s12 = smov (!%p191_p4, %s450_s12), 1  ;;  %v461_v2 = vmov 0   ;;  %vm224_vm0 = vcmask 1043456  }
   0xd   : > { %293 = vmatprep.mubr.f32.mxu0 %v460_v0  ;;  %434 = vset.pattern.permute.xlu0 %v461_v2  ;;  %s406_s18 = sshll.u32 %s530_s12, 3  ;;  %v210_v5 = vld [vmem:[%s522_s1] sm:$0x7]  ;;  %vm220_vm1 = vcmask 31744  }
   0xe   : > { %215 = vperm.xlu0 %434, %v212_v1   ;;  %s198_s21 = scalar_lea.vmem %s521_s0, %s406_s18  ;;  %s208_s26 = scalar_lea.vmem %s524_s3, %s406_s18 }
   0xf   : > { %v211_v3 = vld [vmem:[%s198_s21] sm:$0xff] }
  0x10   : > { %v219_v4 = vcombine.high %v211_v3, %v211_v3 }
  0x12   : > { %401 = vmatprep.subr.msk.mxu0 %vm224_vm0, %v219_v4 }
  0x13   : > { %402 = vmatpush1.msk.msra.mxu0 %vm224_vm0, %v211_v3 }
  0x14   : > { %403 = vmatmul.mubr.msk.f32.vlgmr.msra.gmra.mxu0 %vm220_vm1, %v210_v5 }
  0x89   : > { %v216_v6 = vpop.permute.xlu0 %215 }
  0xd4   : > { %v295_v7 = vpop.f32.mrf.mxu0 }
  0xd5   : > { %v296_v9 = vadd.f32 %v295_v7, %v216_v6 }
  0xd6   : > { %v297_v8 = vpop.f32.mrf.mxu0 }
  0xd7   : > { %v298_v10 = vadd.f32 %v297_v8, %v216_v6 }
  0xd9   : > { %v302_v11 = vcombine.low %v296_v9, %v298_v10 }
  0xdb   : > { %304 = vst [vmem:[%s208_s26] sm:$0x77] %v302_v11 }
  0xdc PF: > { %s13_s14 = sadd.s32 1, %s458_s14   ;;  %s525_s12 = smov %s454_s13 }
  0xdd   : > { %p10_p5 = scmp.ge.s32.totalorder %s13_s14, 4   ;;  %s526_s13 = smov %s528_s15 }
  0xdf   :  { %12 = sbr.rel (!%p10_p5) target bundleno = 2 (0x2), region = 62 }

</bundles_post_ra>
